<compile_context>
chip_gen: v6e
topology: v6e:2x2x1
jax: 0.10.0
libtpu: 0.0.40
codegen_flags: <defaults>
</compile_context>

<pallas_src>
import functools

import jax
import jax.numpy as jnp
from jax import lax
from jax.experimental import pallas as pl
from jax.experimental.pallas import tpu as pltpu

BN_EPS = 1e-5  # torch.nn.BatchNorm1d default


def mlp_kernel(x_ref, *refs, n_hidden):
    """Fused forward for one batch tile.

    refs = [(w, b) * n_hidden, w_out_t, b_out, out_ref]
    BatchNorm is already folded into the (w, b) pairs, so each hidden layer is
    just Linear -> ReLU.  All params are fully VMEM-resident; the batch is
    tiled over the grid.  Dropout is identity in eval mode.
    """
    out_ref = refs[-1]
    h = x_ref[...].astype(jnp.float32)          # (tb, f_in)

    idx = 0
    for _ in range(n_hidden):
        w, b = refs[idx], refs[idx + 1]
        idx += 2
        h = jnp.dot(h, w[...], preferred_element_type=jnp.float32) + b[...]
        h = jnp.maximum(h, 0.0)

    w_out_t, b_out = refs[idx], refs[idx + 1]   # (1, fan_in), (1, 1)
    # Contract (1, fan_in) with (tb, fan_in) over fan_in -> (1, tb):
    # the logits land lane-dense along the batch, so the final store is a
    # single unmasked full-lane row write (same pattern as q @ k.T).
    logits = lax.dot_general(
        w_out_t[...], h,
        dimension_numbers=(((1,), (1,)), ((), ())),
        preferred_element_type=jnp.float32,
    ) + b_out[...]
    out_ref[...] = jax.nn.sigmoid(logits)


def fold_batchnorm(params):
    """Fold eval-mode BN (after ReLU of layer i) into the weights of layer i+1.

    relu_out * scale + shift, then @ W + b
      == relu_out @ (scale[:, None] * W) + (shift @ W + b)
    """
    folded_hidden = []
    pend_scale = None
    pend_shift = None
    for (w, b, gamma, beta, mean, var) in params["hidden"]:
        if pend_scale is not None:
            b = b + pend_shift @ w
            w = pend_scale.reshape(-1, 1) * w
        folded_hidden.append((w, b))
        scale = gamma * lax.rsqrt(var + BN_EPS)
        shift = beta - mean * scale
        pend_scale, pend_shift = scale, shift

    w_out, b_out = params["out"]
    if pend_scale is not None:
        b_out = b_out + pend_shift @ w_out
        w_out = pend_scale.reshape(-1, 1) * w_out
    return folded_hidden, (w_out, b_out)


def simple_nn_forward(x, params, *, tb=128):
    """Fused SimpleNN eval forward via pallas_call, tiling over the batch."""
    # tb feeds both the input sublane dim and the lane-dense output row width.
    assert tb % 128 == 0, "batch tile must be a multiple of 128 (lane width)"
    n, f_in = x.shape

    # Offline BN fold; transpose the 1-column head to a (1, fan_in) row so the
    # kernel can emit batch-lane-dense logits.
    folded_hidden, (w_out, b_out) = fold_batchnorm(params)
    w_out_t = jnp.transpose(w_out)              # (1, fan_in)
    b_out = b_out.reshape(1, 1)

    # Pad ragged batches up to a tile multiple (padded rows are discarded).
    num_tiles = pl.cdiv(n, tb)
    n_pad = num_tiles * tb
    if n_pad != n:
        x = jnp.pad(x, ((0, n_pad - n), (0, 0)))

    flat_params = []
    in_specs = [pl.BlockSpec((tb, f_in), lambda i: (i, 0))]
    for (w, b) in folded_hidden + [(w_out_t, b_out)]:
        flat_params += [w, b]
        # Constant index_map -> params DMA'd once, VMEM-resident across grid.
        in_specs += [pl.BlockSpec(w.shape, lambda i: (0, 0)),
                     pl.BlockSpec(b.shape, lambda i: (0, 0))]

    kernel = functools.partial(mlp_kernel, n_hidden=len(folded_hidden))

    out = pl.pallas_call(
        kernel,
        out_shape=jax.ShapeDtypeStruct((1, n_pad), jnp.float32),
        grid_spec=pltpu.PrefetchScalarGridSpec(
            num_scalar_prefetch=0,
            grid=(num_tiles,),
            in_specs=in_specs,
            out_specs=pl.BlockSpec((1, tb), lambda i: (0, i)),
        ),
        compiler_params=pltpu.CompilerParams(
            dimension_semantics=("parallel",),
        ),
    )(x, *flat_params)

    # Drop batch padding -> (n, 1), matching sigmoid(Linear(., 1)).
    return out[0, :n].reshape(n, 1)


def init_params(key, in_features, hidden_channels_linear):
    """Deterministic synthetic parameters matching the module's shapes.

    torch.nn.Linear weight is [out, in]; we store it pre-transposed [in, out].
    Biases / BN vectors are stored as [1, out] for clean 2-D TPU layouts.
    """
    params = {"hidden": [], "out": None}
    fan_in = in_features
    for h in hidden_channels_linear:
        key, kw, kb, kg, kbeta, km, kv = jax.random.split(key, 7)
        bound = 1.0 / jnp.sqrt(fan_in)
        w = jax.random.uniform(kw, (fan_in, h), jnp.float32, -bound, bound)
        b = jax.random.uniform(kb, (1, h), jnp.float32, -bound, bound)
        gamma = jax.random.uniform(kg, (1, h), jnp.float32, 0.5, 1.5)
        beta = 0.1 * jax.random.normal(kbeta, (1, h), jnp.float32)
        mean = 0.1 * jax.random.normal(km, (1, h), jnp.float32)
        var = jax.random.uniform(kv, (1, h), jnp.float32, 0.5, 1.5)
        params["hidden"].append((w, b, gamma, beta, mean, var))
        fan_in = h
    key, kw, kb = jax.random.split(key, 3)
    bound = 1.0 / jnp.sqrt(fan_in)
    w_out = jax.random.uniform(kw, (fan_in, 1), jnp.float32, -bound, bound)
    b_out = jax.random.uniform(kb, (1, 1), jnp.float32, -bound, bound)
    params["out"] = (w_out, b_out)
    return params


def reference_forward(x, params):
    """Pure-JAX reference of the eval-mode forward (unfolded BN), for checking."""
    h = x
    for w, b, gamma, beta, mean, var in params["hidden"]:
        h = jnp.maximum(h @ w + b, 0.0)
        h = (h - mean) * lax.rsqrt(var + BN_EPS) * gamma + beta
    w_out, b_out = params["out"]
    return jax.nn.sigmoid(h @ w_out + b_out)


if __name__ == "__main__":
    key = jax.random.PRNGKey(0)
    k_x, k_p = jax.random.split(key)

    batch = 200                      # deliberately not a tile multiple
    in_features = 16
    hidden_channels_linear = [32, 32]

    x = jax.random.normal(k_x, (batch, in_features), jnp.float32)
    params = init_params(k_p, in_features, hidden_channels_linear)

    out = simple_nn_forward(x, params, tb=128)   # grid=(2,) -> both v7x TCs busy
    out = jax.block_until_ready(out)

    ref = reference_forward(x, params)
    assert out.shape == (batch, 1)
    assert jnp.allclose(out, ref, atol=1e-5, rtol=1e-5)

    print("KERNEL_OK")
</pallas_src>

<mosaic_0001>
module attributes {stable_mosaic.version = 11 : i64} {
  func.func @mlp_kernel(%arg0: i32, %arg1: memref<128x16xf32, #tpu.memory_space<vmem>>, %arg2: memref<16x32xf32, #tpu.memory_space<vmem>>, %arg3: memref<1x32xf32, #tpu.memory_space<vmem>>, %arg4: memref<32x32xf32, #tpu.memory_space<vmem>>, %arg5: memref<1x32xf32, #tpu.memory_space<vmem>>, %arg6: memref<1x32xf32, #tpu.memory_space<vmem>>, %arg7: memref<1x1xf32, #tpu.memory_space<vmem>>, %arg8: memref<1x128xf32, #tpu.memory_space<vmem>>) attributes {dimension_semantics = [#tpu.dimension_semantics<parallel>], iteration_bounds = array<i64: 2>, scalar_prefetch = 0 : i64, scratch_operands = 0 : i64, tpu.core_type = #tpu.core_type<tc>, window_params = [{transform_indices = @transform_0, window_bounds = array<i64: 128, 16>}, {pipeline_mode = #tpu.pipeline_mode<synchronous>, transform_indices = @transform_1, window_bounds = array<i64: 16, 32>}, {pipeline_mode = #tpu.pipeline_mode<synchronous>, transform_indices = @transform_2, window_bounds = array<i64: 1, 32>}, {pipeline_mode = #tpu.pipeline_mode<synchronous>, transform_indices = @transform_3, window_bounds = array<i64: 32, 32>}, {pipeline_mode = #tpu.pipeline_mode<synchronous>, transform_indices = @transform_4, window_bounds = array<i64: 1, 32>}, {pipeline_mode = #tpu.pipeline_mode<synchronous>, transform_indices = @transform_5, window_bounds = array<i64: 1, 32>}, {pipeline_mode = #tpu.pipeline_mode<synchronous>, transform_indices = @transform_6, window_bounds = array<i64: 1, 1>}, {transform_indices = @transform_7, window_bounds = array<i64: 1, 128>}]} {
    %c0 = arith.constant 0 : index
    %c0_0 = arith.constant 0 : index
    %0 = vector.load %arg1[%c0, %c0_0] : memref<128x16xf32, #tpu.memory_space<vmem>>, vector<128x16xf32>
    %c0_1 = arith.constant 0 : index
    %c0_2 = arith.constant 0 : index
    %1 = vector.load %arg2[%c0_1, %c0_2] : memref<16x32xf32, #tpu.memory_space<vmem>>, vector<16x32xf32>
    %cst = arith.constant dense<0.000000e+00> : vector<128x32xf32>
    %2 = tpu.matmul %0, %1, %cst {dimension_numbers = #tpu.dot_dimension_numbers<[1], [0], [0], [1], [0, 0, 1, 1], [], []>} : vector<128x16xf32>, vector<16x32xf32>, vector<128x32xf32> -> vector<128x32xf32>
    %c0_3 = arith.constant 0 : index
    %c0_4 = arith.constant 0 : index
    %3 = vector.load %arg3[%c0_3, %c0_4] : memref<1x32xf32, #tpu.memory_space<vmem>>, vector<1x32xf32>
    %4 = vector.broadcast %3 : vector<1x32xf32> to vector<128x32xf32>
    %5 = arith.addf %2, %4 : vector<128x32xf32>
    %cst_5 = arith.constant 0.000000e+00 : f32
    %6 = vector.broadcast %cst_5 : f32 to vector<128x32xf32>
    %7 = arith.maximumf %5, %6 : vector<128x32xf32>
    %c0_6 = arith.constant 0 : index
    %c0_7 = arith.constant 0 : index
    %8 = vector.load %arg4[%c0_6, %c0_7] : memref<32x32xf32, #tpu.memory_space<vmem>>, vector<32x32xf32>
    %cst_8 = arith.constant dense<0.000000e+00> : vector<128x32xf32>
    %9 = tpu.matmul %7, %8, %cst_8 {dimension_numbers = #tpu.dot_dimension_numbers<[1], [0], [0], [1], [0, 0, 1, 1], [], []>} : vector<128x32xf32>, vector<32x32xf32>, vector<128x32xf32> -> vector<128x32xf32>
    %c0_9 = arith.constant 0 : index
    %c0_10 = arith.constant 0 : index
    %10 = vector.load %arg5[%c0_9, %c0_10] : memref<1x32xf32, #tpu.memory_space<vmem>>, vector<1x32xf32>
    %11 = vector.broadcast %10 : vector<1x32xf32> to vector<128x32xf32>
    %12 = arith.addf %9, %11 : vector<128x32xf32>
    %cst_11 = arith.constant 0.000000e+00 : f32
    %13 = vector.broadcast %cst_11 : f32 to vector<128x32xf32>
    %14 = arith.maximumf %12, %13 : vector<128x32xf32>
    %c0_12 = arith.constant 0 : index
    %c0_13 = arith.constant 0 : index
    %15 = vector.load %arg6[%c0_12, %c0_13] : memref<1x32xf32, #tpu.memory_space<vmem>>, vector<1x32xf32>
    %cst_14 = arith.constant dense<0.000000e+00> : vector<1x128xf32>
    %16 = tpu.matmul %15, %14, %cst_14 {dimension_numbers = #tpu.dot_dimension_numbers<[1], [1], [0], [0], [0, 0, 1, 0], [], []>} : vector<1x32xf32>, vector<128x32xf32>, vector<1x128xf32> -> vector<1x128xf32>
    %c0_15 = arith.constant 0 : index
    %c0_16 = arith.constant 0 : index
    %17 = vector.load %arg7[%c0_15, %c0_16] : memref<1x1xf32, #tpu.memory_space<vmem>>, vector<1x1xf32>
    %18 = vector.broadcast %17 : vector<1x1xf32> to vector<1x128xf32>
    %19 = arith.addf %16, %18 : vector<1x128xf32>
    %20 = arith.negf %19 : vector<1x128xf32>
    %21 = math.exp %20 : vector<1x128xf32>
    %cst_17 = arith.constant 1.000000e+00 : f32
    %22 = vector.broadcast %cst_17 : f32 to vector<1x128xf32>
    %23 = arith.addf %22, %21 : vector<1x128xf32>
    %24 = arith.divf %22, %23 : vector<1x128xf32>
    %c0_18 = arith.constant 0 : index
    %c0_19 = arith.constant 0 : index
    %25 = vector.load %arg8[%c0_18, %c0_19] : memref<1x128xf32, #tpu.memory_space<vmem>>, vector<1x128xf32>
    tpu.vector_store %arg8[%c0_18, %c0_19], %24 {strides = array<i32>} : memref<1x128xf32, #tpu.memory_space<vmem>>, vector<1x128xf32>,
    return
  }
  func.func @transform_0(%arg0: i32) -> (i32, i32) {
    %c0_i32 = arith.constant 0 : i32
    %c0_i32_0 = arith.constant 0 : i32
    return %arg0, %c0_i32 : i32, i32
  }
  func.func @transform_1(%arg0: i32) -> (i32, i32) {
    %c0_i32 = arith.constant 0 : i32
    %c0_i32_0 = arith.constant 0 : i32
    %c0_i32_1 = arith.constant 0 : i32
    return %c0_i32, %c0_i32_0 : i32, i32
  }
  func.func @transform_2(%arg0: i32) -> (i32, i32) {
    %c0_i32 = arith.constant 0 : i32
    %c0_i32_0 = arith.constant 0 : i32
    %c0_i32_1 = arith.constant 0 : i32
    return %c0_i32, %c0_i32_0 : i32, i32
  }
  func.func @transform_3(%arg0: i32) -> (i32, i32) {
    %c0_i32 = arith.constant 0 : i32
    %c0_i32_0 = arith.constant 0 : i32
    %c0_i32_1 = arith.constant 0 : i32
    return %c0_i32, %c0_i32_0 : i32, i32
  }
  func.func @transform_4(%arg0: i32) -> (i32, i32) {
    %c0_i32 = arith.constant 0 : i32
    %c0_i32_0 = arith.constant 0 : i32
    %c0_i32_1 = arith.constant 0 : i32
    return %c0_i32, %c0_i32_0 : i32, i32
  }
  func.func @transform_5(%arg0: i32) -> (i32, i32) {
    %c0_i32 = arith.constant 0 : i32
    %c0_i32_0 = arith.constant 0 : i32
    %c0_i32_1 = arith.constant 0 : i32
    return %c0_i32, %c0_i32_0 : i32, i32
  }
  func.func @transform_6(%arg0: i32) -> (i32, i32) {
    %c0_i32 = arith.constant 0 : i32
    %c0_i32_0 = arith.constant 0 : i32
    %c0_i32_1 = arith.constant 0 : i32
    return %c0_i32, %c0_i32_0 : i32, i32
  }
  func.func @transform_7(%arg0: i32) -> (i32, i32) {
    %c0_i32 = arith.constant 0 : i32
    %c0_i32_0 = arith.constant 0 : i32
    return %c0_i32, %arg0 : i32, i32
  }
}

</mosaic_0001>

<bundles_post_ra>
// kernel: tpu_custom_call.1
= control target key start
LH: loop header
LB: loop body
LE: loop exit
PB: predicated region body
PF: predicated region fallthrough
CT: control target
= control target key end

     0   :  { %s1522_s0 = inlined_call_operand.vmem [shape: f32[256,16], index: 0, kind: input, shape index: {}]   ;;  %s1523_s1 = inlined_call_operand.vmem [shape: f32[16,32], index: 1, kind: input, shape index: {}]   ;;  %s1524_s2 = inlined_call_operand.vmem [shape: f32[1,32], index: 2, kind: input, shape index: {}]   ;;  %s1525_s3 = inlined_call_operand.vmem [shape: f32[32,32], index: 3, kind: input, shape index: {}]   ;;  %s1526_s4 = inlined_call_operand.vmem [shape: f32[1,32], index: 4, kind: input, shape index: {}]   ;;  %s1527_s5 = inlined_call_operand.vmem [shape: f32[1,32], index: 5, kind: input, shape index: {}]   ;;  %s1528_s6 = inlined_call_operand.<no memory space> [shape: f32[1,1], index: 6, kind: input, shape index: {}]   ;;  %s1529_s7 = inlined_call_operand.hbm [shape: f32[1,256], index: 7, kind: output, shape index: {}]  }
   0x1   :  { %v12_v0 = vstv %s1528_s6 }
   0x2   :  { %13 = vst [vmem:[#allocation2] sm:$0x1] %v12_v0 }
   0x3   :  { %14 = vsyncpa [#allocation4], 0 }
   0x4   :  { %16 = vsyncpa [#allocation4 + $0x1], 0  ;;  %s1310_s26 = smov 0   ;;  %s1312_s27 = smov 0  }
   0x5   :  { %s1314_s28 = smov 0   ;;  %s1316_s29 = smov 0  }
   0x6 LB: > { %s942_s6 = sadd.s32 4294967295, %s1261_s29   ;;  %s943_s30 = sadd.s32 4294967294, %s1261_s29   ;;  %s1261_s29 = sphi %s1316_s29, %s1535_s29   ;;  %s1257_s28 = sphi %s1314_s28, %s1534_s28   ;;  %s1253_s27 = sphi %s1312_s27, %s1533_s27   ;;  %s1249_s26 = sphi %s1310_s26, %s1532_s26  }
   0x7   : > { %s1333_s8 = sadd.s32 1, %s1261_s29   ;;  %s181_s9 = sadd.s32 1, %s1257_s28 }
   0x8   : > { %s178_s10 = ssub.s32 %s1261_s29, %s1333_s8  ;;  %p191_p0 = scmp.ne.s32.totalorder %s1257_s28, %s1253_s27 }
   0x9   : > { %p179_p1 = scmp.eq.s32.totalorder %s178_s10, 0  ;;  %p192_p2 = scmp.eq.s32.totalorder %s942_s6, 1 }
   0xa   : > { %p197_p3 = scmp.ne.s32.totalorder %s1253_s27, %s1249_s26  ;;  %p198_p4 = scmp.eq.s32.totalorder %s943_s30, 1 }
   0xb   : > { %s1343_s11 = scalar_select %p179_p1, %s1257_s28, %s181_s9  }
   0xc   : > { %p1345_p5 = por %p192_p2, %p191_p0  ;;  %p1349_p6 = por %p198_p4, %p197_p3 }
   0xd   : > { %p946_p7 = scmp.ge.s32.totalorder %s1261_s29, 1  ;;  %p243_p8 = scmp.lt.s32.totalorder %s1261_s29, 3 }
   0xf   : > { %p244_p9 = pnand %p946_p7, %p243_p8 }
  0x10   : > { %s1361_s18 = sshll.u32 (!%p244_p9), %s942_s6, 4  ;;  %s272_s23 = sand.u32 (!%p244_p9), 1, %s1253_s27  }
  0x11   : > { %247 = sbr.rel (%p244_p9) target bundleno = 756 (0x2f4), region = 48  ;;  %p275_p10 = scmp.lt.s32.totalorder (!%p244_p9), %s1361_s18, 31 }
  0x12   : > { %s273_s24 = scalar_lea.vmem (!%p244_p9), [#allocation3], %s272_s23  ;;  %s1487_s9 = scalar_lea.hbm (!%p244_p9), %s1529_s7, %s1361_s18 }
  0x13   : > { %s876_s10 = scalar_lea.sflag (!%p244_p9), [#allocation4], %s272_s23  ;;  %s1266_s15 = smov (!%p244_p9), [#allocation3]  }
  0x14   : > { %s1205_s16 = sshll.u32 (!%p244_p9), %s1266_s15, 4  ;;  %s1206_s16 = int_to_ptr.vmem [resolvable:$false] %s1205_s16 }
  0x15   : > { %s1207_s17 = scalar_lea.vmem (!%p244_p9), %s1206_s16, 32 }
  0x16   : > { %v297_v1 = vld [vmem:[%s1523_s1 + $0x8] sm:$0xff]  ;;  %v296_v2 = vld [vmem:[%s1523_s1] sm:$0xff]  ;;  %v518_v3 = vld [vmem:[%s1525_s3 + $0x18] sm:$0xff]  ;;  %s276_s21 = scalar_select %p275_p10, %s1361_s18, 31  ;;  %vm305_vm0 = vcmask 130048   ;;  %vm526_vm1 = vcmask 261120  }
  0x17   : > { %1059 = vmatprep.subr.mxu1 %v297_v1  ;;  %v517_v7 = vld [vmem:[%s1525_s3 + $0x10] sm:$0xff]  ;;  %v516_v9 = vld [vmem:[%s1525_s3 + $0x8] sm:$0xff]  ;;  %v515_v11 = vld [vmem:[%s1525_s3] sm:$0xff]  ;;  %vm1264_vm2 = vmmov 0  }
  0x18   : > { %1060 = vmatpush3.msra.mxu1 %v297_v1  ;;  %s948_s22 = sshll.u32 %s276_s21, 3  ;;  %v949_v23 = vld [vmem:[%s1524_s2] ss:$0 sm:$0xff] }
  0x19   : > { %1061 = vmatprep.subr.mxu1 %v296_v2  ;;  %s1371_s25 = scalar_lea.vmem %s1522_s0, %s948_s22 }
  0x1a   : > { %1062 = vmatpush3.msra.mxu1 %v296_v2  ;;  %v280_v4 = vld [vmem:[%s1371_s25] sm:$0xff]  ;;  %v281_v5 = vld [vmem:[%s1371_s25 + $0x8] sm:$0xff]  ;;  %v282_v6 = vld [vmem:[%s1371_s25 + $0x10] sm:$0xff] }
  0x1b   : > { %1087 = vmatprep.subr.mxu1 %v518_v3  ;;  %1063 = vmatprep.mubr.msk.f32.mxu1 %vm305_vm0, %v280_v4  ;;  %v283_v8 = vld [vmem:[%s1371_s25 + $0x18] sm:$0xff]  ;;  %v284_v10 = vld [vmem:[%s1371_s25 + $0x20] sm:$0xff]  ;;  %v285_v12 = vld [vmem:[%s1371_s25 + $0x28] sm:$0xff] }
  0x1c   : > { %1064 = vmatmul.mubr.msk.f32.vlgmr.msra.gmra.mxu1 %vm305_vm0, %v281_v5  ;;  %v286_v13 = vld [vmem:[%s1371_s25 + $0x30] sm:$0xff]  ;;  %v287_v14 = vld [vmem:[%s1371_s25 + $0x38] sm:$0xff]  ;;  %v288_v15 = vld [vmem:[%s1371_s25 + $0x40] sm:$0xff] }
  0x1d   : > { %1066 = vmatprep.mubr.msk.f32.mxu1 %vm305_vm0, %v282_v6  ;;  %1088 = vmatpush3.msra.mxu1 %v518_v3  ;;  %v289_v16 = vld [vmem:[%s1371_s25 + $0x48] sm:$0xff]  ;;  %v290_v17 = vld [vmem:[%s1371_s25 + $0x50] sm:$0xff]  ;;  %v291_v18 = vld [vmem:[%s1371_s25 + $0x58] sm:$0xff] }
  0x1e   : > { %1089 = vmatprep.subr.mxu1 %v517_v7  ;;  %v292_v19 = vld [vmem:[%s1371_s25 + $0x60] sm:$0xff]  ;;  %v293_v20 = vld [vmem:[%s1371_s25 + $0x68] sm:$0xff]  ;;  %v294_v21 = vld [vmem:[%s1371_s25 + $0x70] sm:$0xff] }
  0x1f   : > { %1090 = vmatpush3.msra.mxu1 %v517_v7  ;;  %v295_v22 = vld [vmem:[%s1371_s25 + $0x78] sm:$0xff]  ;;  %s888_s25 = sshll.u32 %s273_s24, 4  ;;  %s889_s25 = int_to_ptr.vmem [resolvable:$true] %s888_s25 }
  0x20   : > { %1067 = vmatmul.mubr.msk.f32.gmra.mxu1 %vm305_vm0, %v283_v8  ;;  %1091 = vmatprep.subr.mxu1 %v516_v9  ;;  %v1263_v8 = vmov 0.0   ;;  %s1201_s14 = scalar_lea.vmem %s889_s25, 16  ;;  %p1208_p0 = scmp.lt.s32.totalorder %s889_s25, %s1206_s16 }
  0x21   : > { %1069 = vmatprep.mubr.msk.f32.mxu1 %vm305_vm0, %v284_v10  ;;  %1092 = vmatpush3.msra.mxu1 %v516_v9  ;;  %v737_v9 = vld [vmem:[#allocation2] sm:$0x1]  ;;  %v1265_v10 = vmov 0   ;;  %p1202_p11 = scmp.ne.s32.totalorder %s889_s25, %s1201_s14  ;;  %p1209_p1 = scmp.lt.s32.totalorder %s1207_s17, %s1201_s14 }
  0x22   : > { %1093 = vmatprep.subr.mxu1 %v515_v11  ;;  %1119 = vmatprep.subr.mxu0 %v1263_v8 }
  0x23   : > { %1094 = vmatpush3.msra.mxu1 %v515_v11  ;;  %1151 = vmatprep.mubr.msk.f32.mxu0 %vm1264_vm2, %v1263_v8  ;;  %p1203_p12 = pnand %p1202_p11, %p1345_p5  ;;  %p1210_p2 = por %p1209_p1, %p1208_p0 }
  0x24   : > { %1070 = vmatmul.mubr.msk.f32.gmra.mxu1 %vm305_vm0, %v285_v12  ;;  %1196 = vset.pattern.permute.xlu0 %v1265_v10 }
  0x25   : > { %1072 = vmatprep.mubr.msk.f32.mxu1 %vm305_vm0, %v286_v13  ;;  %740 = vperm.xlu0 %1196, %v737_v9   ;;  %p1204_p13 = pneg %p1203_p12 }
  0x27   : > { %p1211_p3 = pnand %p1210_p2, %p1204_p13 }
  0x28   : > { %1073 = vmatmul.mubr.msk.f32.gmra.mxu1 %vm305_vm0, %v287_v14 }
  0x29   : > { %1075 = vmatprep.mubr.msk.f32.mxu1 %vm305_vm0, %v288_v15 }
  0x2c   : > { %1076 = vmatmul.mubr.msk.f32.gmra.mxu1 %vm305_vm0, %v289_v16 }
  0x2d   : > { %1078 = vmatprep.mubr.msk.f32.mxu1 %vm305_vm0, %v290_v17 }
  0x30   : > { %1079 = vmatmul.mubr.msk.f32.gmra.mxu1 %vm305_vm0, %v291_v18 }
  0x31   : > { %1081 = vmatprep.mubr.msk.f32.mxu1 %vm305_vm0, %v292_v19 }
  0x34   : > { %1082 = vmatmul.mubr.msk.f32.gmra.mxu1 %vm305_vm0, %v293_v20 }
  0x35   : > { %1084 = vmatprep.mubr.msk.f32.mxu1 %vm305_vm0, %v294_v21 }
  0x38   : > { %1085 = vmatmul.mubr.msk.f32.gmra.mxu1 %vm305_vm0, %v295_v22 }
  0xdc   : > { %v1065_v24 = vpop.f32.mrf.mxu1 }
  0xdd   : > { %v426_v25 = vadd.f32 %v1065_v24, %v949_v23 }
  0xde   : > { %v420_v26 = vpop.f32.mrf.mxu1 }
  0xdf   : > { %v421_v27 = vadd.f32 %v949_v23, %v420_v26  ;;  %v500_v30 = vmax.f32 %v426_v25, 0.0  ;;  %v966_v25 = vld [vmem:[%s1526_s4] ss:$0 sm:$0xff] }
  0xe0   : > { %v1068_v28 = vpop.f32.mrf.mxu1 }
  0xe1   : > { %v499_v29 = vmax.f32 %v421_v27, 0.0  ;;  %v436_v31 = vadd.f32 %v1068_v28, %v949_v23 }
  0xe2   : > { %v430_v32 = vpop.f32.mrf.mxu1 }
  0xe3   : > { %v431_v33 = vadd.f32 %v949_v23, %v430_v32  ;;  %1095 = vmatprep.mubr.msk.f32.mxu1 %vm526_vm1, %v499_v29  ;;  %v502_v36 = vmax.f32 %v436_v31, 0.0 }
  0xe4   : > { %v1071_v34 = vpop.f32.mrf.mxu1  ;;  %1096 = vmatmul.mubr.msk.f32.vlgmr.msra.gmra.mxu1 %vm526_vm1, %v500_v30 }
  0xe5   : > { %v501_v35 = vmax.f32 %v431_v33, 0.0  ;;  %v446_v37 = vadd.f32 %v1071_v34, %v949_v23 }
  0xe6   : > { %v440_v38 = vpop.f32.mrf.mxu1 }
  0xe7   : > { %v441_v39 = vadd.f32 %v949_v23, %v440_v38  ;;  %1098 = vmatprep.mubr.msk.f32.mxu1 %vm526_vm1, %v501_v35  ;;  %v504_v42 = vmax.f32 %v446_v37, 0.0 }
  0xe8   : > { %v1074_v40 = vpop.f32.mrf.mxu1  ;;  %1099 = vmatmul.mubr.msk.f32.gmra.mxu1 %vm526_vm1, %v502_v36 }
  0xe9   : > { %v503_v41 = vmax.f32 %v441_v39, 0.0  ;;  %v456_v43 = vadd.f32 %v1074_v40, %v949_v23 }
  0xea   : > { %v450_v44 = vpop.f32.mrf.mxu1 }
  0xeb   : > { %v451_v45 = vadd.f32 %v949_v23, %v450_v44  ;;  %1101 = vmatprep.mubr.msk.f32.mxu1 %vm526_vm1, %v503_v41  ;;  %v506_v48 = vmax.f32 %v456_v43, 0.0 }
  0xec   : > { %v1077_v46 = vpop.f32.mrf.mxu1  ;;  %1102 = vmatmul.mubr.msk.f32.gmra.mxu1 %vm526_vm1, %v504_v42 }
  0xed   : > { %v505_v47 = vmax.f32 %v451_v45, 0.0  ;;  %v466_v49 = vadd.f32 %v1077_v46, %v949_v23 }
  0xee   : > { %v460_v50 = vpop.f32.mrf.mxu1 }
  0xef   : > { %v461_v51 = vadd.f32 %v949_v23, %v460_v50  ;;  %1104 = vmatprep.mubr.msk.f32.mxu1 %vm526_vm1, %v505_v47  ;;  %v508_v54 = vmax.f32 %v466_v49, 0.0 }
  0xf0   : > { %v1080_v52 = vpop.f32.mrf.mxu1  ;;  %1105 = vmatmul.mubr.msk.f32.gmra.mxu1 %vm526_vm1, %v506_v48 }
  0xf1   : > { %v507_v53 = vmax.f32 %v461_v51, 0.0  ;;  %v476_v55 = vadd.f32 %v1080_v52, %v949_v23 }
  0xf2   : > { %v470_v56 = vpop.f32.mrf.mxu1 }
  0xf3   : > { %v471_v57 = vadd.f32 %v949_v23, %v470_v56  ;;  %1107 = vmatprep.mubr.msk.f32.mxu1 %vm526_vm1, %v507_v53  ;;  %v510_v60 = vmax.f32 %v476_v55, 0.0 }
  0xf4   : > { %v1083_v58 = vpop.f32.mrf.mxu1  ;;  %1108 = vmatmul.mubr.msk.f32.gmra.mxu1 %vm526_vm1, %v508_v54 }
  0xf5   : > { %v509_v59 = vmax.f32 %v471_v57, 0.0  ;;  %v486_v61 = vadd.f32 %v1083_v58, %v949_v23 }
  0xf6   : > { %v480_v62 = vpop.f32.mrf.mxu1 }
  0xf7   : > { %v481_v63 = vadd.f32 %v949_v23, %v480_v62  ;;  %1110 = vmatprep.mubr.msk.f32.mxu1 %vm526_vm1, %v509_v59  ;;  %v512_v2 = vmax.f32 %v486_v61, 0.0  ;;  %v743_v61 = vlaneseq }
  0xf8   : > { %v1086_v0 = vpop.f32.mrf.mxu1  ;;  %1111 = vmatmul.mubr.msk.f32.gmra.mxu1 %vm526_vm1, %v510_v60  ;;  %v736_v60 = vld [vmem:[%s1527_s5] sm:$0x1] }
  0xf9   : > { %v511_v1 = vmax.f32 %v481_v63, 0.0  ;;  %v496_v3 = vadd.f32 %v1086_v0, %v949_v23  ;;  %v744_v62 = vshrl.u32 %v743_v61, 7  ;;  %v741_v0 = vpop.permute.xlu0 %740 }
  0xfa   : > { %v490_v4 = vpop.f32.mrf.mxu1 }
  0xfb   : > { %v491_v5 = vadd.f32 %v949_v23, %v490_v4  ;;  %1113 = vmatprep.mubr.msk.f32.mxu1 %vm526_vm1, %v511_v1  ;;  %v514_v7 = vmax.f32 %v496_v3, 0.0  ;;  %v745_v63 = vsub.s32 0, %v744_v62 }
  0xfc   : > { %1114 = vmatmul.mubr.msk.f32.gmra.mxu1 %vm526_vm1, %v512_v2 }
  0xfd   : > { %v513_v6 = vmax.f32 %v491_v5, 0.0  ;;  %v746_v1 = vrot.slane %v741_v0, %v745_v63 }
  0xff   : > { %1116 = vmatprep.mubr.msk.f32.mxu1 %vm526_vm1, %v513_v6 }
 0x100   : > { %1117 = vmatmul.mubr.msk.f32.gmra.mxu1 %vm526_vm1, %v514_v7 }
 0x1a4   : > { %v1435_v11 = vpop.f32.mrf.mxu1 }
 0x1a5   : > { %v647_v55 = vadd.f32 %v1435_v11, %v966_v25 }
 0x1a6   : > { %v1437_v12 = vpop.f32.mrf.mxu1 }
 0x1a7   : > { %v721_v57 = vmax.f32 %v647_v55, 0.0  ;;  %v642_v58 = vadd.f32 %v966_v25, %v1437_v12 }
 0x1a8   : > { %v1100_v13 = vpop.f32.mrf.mxu1 }
 0x1a9   : > { %v657_v51 = vadd.f32 %v1100_v13, %v966_v25  ;;  %v720_v59 = vmax.f32 %v642_v58, 0.0 }
 0x1aa   : > { %v1439_v14 = vpop.f32.mrf.mxu1 }
 0x1ab   : > { %v723_v53 = vmax.f32 %v657_v51, 0.0  ;;  %v652_v54 = vadd.f32 %v966_v25, %v1439_v14 }
 0x1ac   : > { %v1103_v15 = vpop.f32.mrf.mxu1 }
 0x1ad   : > { %v667_v47 = vadd.f32 %v1103_v15, %v966_v25  ;;  %v722_v56 = vmax.f32 %v652_v54, 0.0 }
 0x1ae   : > { %v661_v16 = vpop.f32.mrf.mxu1 }
 0x1af   : > { %v725_v49 = vmax.f32 %v667_v47, 0.0  ;;  %v662_v50 = vadd.f32 %v966_v25, %v661_v16 }
 0x1b0   : > { %v1106_v17 = vpop.f32.mrf.mxu1 }
 0x1b1   : > { %v677_v43 = vadd.f32 %v1106_v17, %v966_v25  ;;  %v724_v52 = vmax.f32 %v662_v50, 0.0 }
 0x1b2   : > { %v671_v18 = vpop.f32.mrf.mxu1 }
 0x1b3   : > { %v727_v45 = vmax.f32 %v677_v43, 0.0  ;;  %v672_v46 = vadd.f32 %v966_v25, %v671_v18 }
 0x1b4   : > { %v1109_v19 = vpop.f32.mrf.mxu1 }
 0x1b5   : > { %v687_v39 = vadd.f32 %v1109_v19, %v966_v25  ;;  %v726_v48 = vmax.f32 %v672_v46, 0.0 }
 0x1b6   : > { %v681_v20 = vpop.f32.mrf.mxu1 }
 0x1b7   : > { %v729_v41 = vmax.f32 %v687_v39, 0.0  ;;  %v682_v42 = vadd.f32 %v966_v25, %v681_v20 }
 0x1b8   : > { %v1112_v21 = vpop.f32.mrf.mxu1 }
 0x1b9   : > { %v697_v35 = vadd.f32 %v1112_v21, %v966_v25  ;;  %v728_v44 = vmax.f32 %v682_v42, 0.0 }
 0x1ba   : > { %v691_v22 = vpop.f32.mrf.mxu1 }
 0x1bb   : > { %v731_v37 = vmax.f32 %v697_v35, 0.0  ;;  %v692_v38 = vadd.f32 %v966_v25, %v691_v22 }
 0x1bc   : > { %v1115_v23 = vpop.f32.mrf.mxu1 }
 0x1bd   : > { %v707_v31 = vadd.f32 %v1115_v23, %v966_v25  ;;  %v730_v40 = vmax.f32 %v692_v38, 0.0 }
 0x1be   : > { %v701_v24 = vpop.f32.mrf.mxu1 }
 0x1bf   : > { %v733_v33 = vmax.f32 %v707_v31, 0.0  ;;  %v702_v34 = vadd.f32 %v966_v25, %v701_v24 }
 0x1c0   : > { %v1118_v26 = vpop.f32.mrf.mxu1 }
 0x1c1   : > { %v717_v27 = vadd.f32 %v1118_v26, %v966_v25  ;;  %v732_v36 = vmax.f32 %v702_v34, 0.0 }
 0x1c2   : > { %v711_v28 = vpop.f32.mrf.mxu1 }
 0x1c3   : > { %v735_v29 = vmax.f32 %v717_v27, 0.0  ;;  %v712_v30 = vadd.f32 %v966_v25, %v711_v28 }
 0x1c5   : > { %1120 = vmatpush3.xpose.msk.msra.mxu0 %vm526_vm1, %v735_v29  ;;  %v734_v32 = vmax.f32 %v712_v30, 0.0 }
 0x1c6   : > { %1121 = vmatprep.subr.mxu0 %v1263_v8 }
 0x1c9   : > { %1122 = vmatpush3.xpose.msk.msra.mxu0 %vm526_vm1, %v734_v32 }
 0x1ca   : > { %1123 = vmatprep.subr.mxu0 %v1263_v8 }
 0x1cd   : > { %1124 = vmatpush3.xpose.msk.msra.mxu0 %vm526_vm1, %v733_v33 }
 0x1ce   : > { %1125 = vmatprep.subr.mxu0 %v1263_v8 }
 0x1d1   : > { %1126 = vmatpush3.xpose.msk.msra.mxu0 %vm526_vm1, %v732_v36 }
 0x1d2   : > { %1127 = vmatprep.subr.mxu0 %v1263_v8 }
 0x1d5   : > { %1128 = vmatpush3.xpose.msk.msra.mxu0 %vm526_vm1, %v731_v37 }
 0x1d6   : > { %1129 = vmatprep.subr.mxu0 %v1263_v8 }
 0x1d9   : > { %1130 = vmatpush3.xpose.msk.msra.mxu0 %vm526_vm1, %v730_v40 }
 0x1da   : > { %1131 = vmatprep.subr.mxu0 %v1263_v8 }
 0x1dd   : > { %1132 = vmatpush3.xpose.msk.msra.mxu0 %vm526_vm1, %v729_v41 }
 0x1de   : > { %1133 = vmatprep.subr.mxu0 %v1263_v8 }
 0x1e1   : > { %1134 = vmatpush3.xpose.msk.msra.mxu0 %vm526_vm1, %v728_v44 }
 0x1e2   : > { %1135 = vmatprep.subr.mxu0 %v1263_v8 }
 0x1e5   : > { %1136 = vmatpush3.xpose.msk.msra.mxu0 %vm526_vm1, %v727_v45 }
 0x1e6   : > { %1137 = vmatprep.subr.mxu0 %v1263_v8 }
 0x1e9   : > { %1138 = vmatpush3.xpose.msk.msra.mxu0 %vm526_vm1, %v726_v48 }
 0x1ea   : > { %1139 = vmatprep.subr.mxu0 %v1263_v8 }
 0x1ed   : > { %1140 = vmatpush3.xpose.msk.msra.mxu0 %vm526_vm1, %v725_v49 }
 0x1ee   : > { %1141 = vmatprep.subr.mxu0 %v1263_v8 }
 0x1f1   : > { %1142 = vmatpush3.xpose.msk.msra.mxu0 %vm526_vm1, %v724_v52 }
 0x1f2   : > { %1143 = vmatprep.subr.mxu0 %v1263_v8 }
 0x1f5   : > { %1144 = vmatpush3.xpose.msk.msra.mxu0 %vm526_vm1, %v723_v53 }
 0x1f6   : > { %1145 = vmatprep.subr.mxu0 %v1263_v8 }
 0x1f9   : > { %1146 = vmatpush3.xpose.msk.msra.mxu0 %vm526_vm1, %v722_v56 }
 0x1fa   : > { %1147 = vmatprep.subr.mxu0 %v1263_v8 }
 0x1fd   : > { %1148 = vmatpush3.xpose.msk.msra.mxu0 %vm526_vm1, %v721_v57 }
 0x1fe   : > { %1149 = vmatprep.subr.mxu0 %v1263_v8 }
 0x201   : > { %1150 = vmatpush3.xpose.msk.msra.mxu0 %vm526_vm1, %v720_v59 }
 0x204   : > { %1152 = vmatmul.mubr.msk.f32.vlgmr.msra.gmra.mxu0 %vm526_vm1, %v736_v60 }
 0x2c4   : > { %v864_v2 = vpop.f32.mrf.mxu0 }
 0x2c5   : > { %v865_v3 = vadd.f32 %v864_v2, %v746_v1 }
 0x2c6   : > { %v1153_v4 = vpop.f32.mrf.mxu0 }
 0x2c7   : > { %v1000_v5 = vmul.f32 -1.442695, %v865_v3 }
 0x2c9   : > { %1197 = vpow2.f32 %v1000_v5 }
 0x2d6   : > { %v1198_v6 = vpop.eup %1197 }
 0x2d7   : > { %v871_v7 = vadd.f32 1.0, %v1198_v6 }
 0x2d9   : > { %1199 = vrcp.f32 %v871_v7 }
 0x2e6   : > { %v1200_v8 = vpop.eup %1199 }
 0x2e7   : > { %874 = vst [vmem:[%s273_s24] sm:$0x1] %v1200_v8 }
 0x2e8   : > { %1214 = shalt.err (!%p1211_p3)
}
 0x2e9   : > { %s1215_s18 = scalar_lea.hbm %s1487_s9, 16  ;;  %s1219_s21 = scalar_lea.hbm %s1529_s7, 32 }
 0x2ea   : > { %p1216_p4 = scmp.ne.s32.totalorder %s1487_s9, %s1215_s18  ;;  %p1220_p9 = scmp.lt.s32.totalorder %s1487_s9, %s1529_s7 }
 0x2eb   : > { %p1221_p10 = scmp.lt.s32.totalorder %s1219_s21, %s1215_s18 }
 0x2ec   : > { %p1217_p7 = pnand %p1216_p4, %p1345_p5 }
 0x2ed   : > { %p1222_p11 = por %p1221_p10, %p1220_p9 }
 0x2ee   : > { %p1218_p8 = pneg %p1217_p7 }
 0x2f0   : > { %p1223_p12 = pnand %p1222_p11, %p1218_p8 }
 0x2f2   : > { %1226 = shalt.err (!%p1223_p12)
}
 0x2f3   : > { %1154 = dma.vmem_to_hbm [thread:$0]  (%p1345_p5), %s889_s25, 16, %s1487_s9, %s876_s10  }
 0x2f4 PF: > { %p1160_p13 = scmp.ge.s32.totalorder %s1261_s29, 2  ;;  %s900_s24 = sand.u32 1, %s1249_s26  }
 0x2f5   : > { %s901_s6 = scalar_lea.sflag [#allocation4], %s900_s24 }
 0x2f6   : > { %p1157_p0 = pnand %p1160_p13, %p1349_p6 }
 0x2f8   : > { %p1158_p1 = pneg %p1157_p0 }
 0x2fa   : > { %1244 = dma.done.wait (%p1158_p1), %s901_s6, 16  }
 0x2fb   : > { %1246 = vsyncadd (%p1158_p1), %s901_s6, 4294967280  ;;  %p19_p2 = scmp.ge.s32.totalorder %s1333_s8, 4   ;;  %s1532_s26 = smov %s1253_s27 }
 0x2fc   : > { %s1533_s27 = smov %s1257_s28  ;;  %s1534_s28 = smov %s1343_s11 }
 0x2fd   : > { %s1535_s29 = smov %s1333_s8  ;;  %21 = sbr.rel (!%p19_p2) target bundleno = 6 (0x6), region = 83 }
 0x302   :  { %905 = vsyncpa [#allocation4], 1 }
 0x303   :  { %907 = vsyncpa [#allocation4 + $0x1], 1 }

</bundles_post_ra>
